<compile_context>
chip_gen: v5e
topology: v5e:2x2
jax: 0.10.0
libtpu: 0.0.40
codegen_flags: <defaults>
</compile_context>

<pallas_src>
import numpy as np
import jax
import jax.numpy as jnp
from jax.experimental import pallas as pl
from jax.experimental.pallas import tpu as pltpu

_LANES = 128
_SUBLANES = 8
_TILE = _LANES * _SUBLANES          # 1024 elements = one f32 (8,128) vreg tile
_MAX_BLOCK_GROUPS = 512             # 512 tiles = 2 MiB per f32 input block


def _make_bce_block_kernel(block_groups, unroll):
    """Weighted BCE partial-sum over one (block_groups, 8, 128) block."""

    def kernel(w_ref, p_ref, t_ref, o_ref):
        base = pl.program_id(0) * block_groups

        def body(g, acc):
            p = p_ref[g].astype(jnp.float32)            # (8, 128): one vreg
            t = t_ref[g].astype(jnp.float32)
            # PyTorch nn.BCELoss clamps the log terms at -100.
            log_p = jnp.maximum(jnp.log(p), -100.0)
            log_1mp = jnp.maximum(jnp.log(1.0 - p), -100.0)
            # t*log_p + (1-t)*log_1mp ; the leading minus sign and the
            # 1/(n_scales*n_elem) mean-normalization are folded into w.
            s = log_1mp + t * (log_p - log_1mp)
            return acc + w_ref[base + g] * s             # scalar * vreg FMA

        acc = jax.lax.fori_loop(
            0, block_groups, body,
            jnp.zeros((_SUBLANES, _LANES), jnp.float32),
            unroll=unroll)
        o_ref[...] = acc[None, :, :]

    return kernel


def _nearest_resize_nchw(x, out_hw):
    """F.interpolate(x, size=out_hw, mode='nearest') for NCHW (wrapper glue)."""
    out_h, out_w = out_hw
    in_h, in_w = x.shape[2], x.shape[3]
    if (in_h, in_w) == (out_h, out_w):
        return x
    if in_h % out_h == 0 and in_w % out_w == 0:
        # Exact integer downsample: strided slice, no gather.
        return x[:, :, ::in_h // out_h, ::in_w // out_w]
    # Two 1-D takes (TPU-friendly) instead of one 2-D advanced index.
    h_idx = (jnp.arange(out_h) * in_h) // out_h
    w_idx = (jnp.arange(out_w) * in_w) // out_w
    return jnp.take(jnp.take(x, h_idx, axis=2), w_idx, axis=3)


@jax.jit
def multiscaled_bce_loss(inputs, target):
    """JAX/Pallas equivalent of MultiScaled_BCELoss.forward.

    inputs: list of n_scales NCHW prediction tensors with values in (0, 1).
    target: NCHW target tensor.
    """
    # TODO(synk): the chained nearest-resize is plain-JAX wrapper glue; fusing
    # the H/W stride into the target BlockSpec/index_map is not done here.
    n_scales = len(inputs)
    p_parts, t_parts, w_parts = [], [], []
    total_groups = 0
    for inp in inputs:
        # Chained re-interpolation of `target`, exactly as in the module.
        target = _nearest_resize_nchw(target, tuple(inp.shape[2:]))
        n = inp.size
        groups = -(-n // _TILE)
        pad = groups * _TILE - n
        p_parts.append(inp.reshape(-1))
        t_parts.append(target.reshape(-1))
        if pad:
            # pred = target = 1 -> BCE term is exactly 0 under the -100 clamp,
            # so the (<1024-element) tail padding never perturbs the sum.
            p_parts.append(jnp.ones((pad,), inp.dtype))
            t_parts.append(jnp.ones((pad,), target.dtype))
        # Mean-over-elements, mean-over-scales and BCE negation folded into a
        # static per-group weight (built with numpy -> XLA constant).
        w_parts.append(np.full((groups,), -1.0 / (n_scales * n), np.float32))
        total_groups += groups

    # Biggest block that fits default scoped VMEM on all generations, but keep
    # >= 2 blocks when possible so both v7x TensorCores get work.
    block_groups = max(1, min(_MAX_BLOCK_GROUPS, -(-total_groups // 2)))
    num_blocks = -(-total_groups // block_groups)
    padded_groups = num_blocks * block_groups
    if padded_groups != total_groups:
        extra = (padded_groups - total_groups) * _TILE
        p_parts.append(jnp.ones((extra,), inputs[0].dtype))
        t_parts.append(jnp.ones((extra,), target.dtype))
        w_parts.append(np.zeros((padded_groups - total_groups,), np.float32))

    p3 = jnp.concatenate(p_parts).reshape(padded_groups, _SUBLANES, _LANES)
    t3 = jnp.concatenate(t_parts).reshape(padded_groups, _SUBLANES, _LANES)
    w = jnp.asarray(np.concatenate(w_parts))

    partials = pl.pallas_call(
        _make_bce_block_kernel(block_groups,
                               unroll=max(1, min(8, block_groups))),
        out_shape=jax.ShapeDtypeStruct((num_blocks, _SUBLANES, _LANES),
                                       jnp.float32),
        grid=(num_blocks,),
        in_specs=[
            # Whole per-group weight table resident in SMEM (scalar reads).
            pl.BlockSpec(memory_space=pltpu.MemorySpace.SMEM),
            pl.BlockSpec((block_groups, _SUBLANES, _LANES),
                         lambda i: (i, 0, 0)),
            pl.BlockSpec((block_groups, _SUBLANES, _LANES),
                         lambda i: (i, 0, 0)),
        ],
        out_specs=pl.BlockSpec((1, _SUBLANES, _LANES), lambda i: (i, 0, 0)),
        compiler_params=pltpu.CompilerParams(
            dimension_semantics=("parallel",)),
    )(w, p3, t3)

    # Weights already carry the minus sign and all normalizations.
    return jnp.sum(partials)


def _reference(inputs, target):
    """Pure-JAX reference for validation."""
    losses = []
    for inp in inputs:
        target = _nearest_resize_nchw(target, tuple(inp.shape[2:]))
        bce = -(target * jnp.maximum(jnp.log(inp), -100.0)
                + (1.0 - target) * jnp.maximum(jnp.log(1.0 - inp), -100.0))
        losses.append(jnp.mean(bce))
    return jnp.mean(jnp.stack(losses))


if __name__ == "__main__":
    # MultiScaled_BCELoss has no learned parameters (nn.BCELoss is stateless).
    n_scales = 3
    batch, channels = 2, 4
    spatial = [16, 8, 4]  # per-scale spatial sizes of the prediction pyramid

    key = jax.random.PRNGKey(0)
    keys = jax.random.split(key, n_scales + 1)
    inputs = [
        jax.nn.sigmoid(
            jax.random.normal(keys[i], (batch, channels, s, s), jnp.float32))
        for i, s in enumerate(spatial)
    ]
    target = jax.random.uniform(
        keys[-1], (batch, channels, spatial[0], spatial[0]), jnp.float32)

    loss = multiscaled_bce_loss(inputs, target)
    loss = jax.block_until_ready(loss)

    ref = _reference(inputs, target)
    assert jnp.allclose(loss, ref, atol=1e-5, rtol=1e-5), (loss, ref)
    print("KERNEL_OK")
</pallas_src>

<mosaic_0001>
module attributes {stable_mosaic.version = 11 : i64} {
  func.func @kernel(%arg0: i32, %arg1: memref<4xf32, #tpu.memory_space<smem>>, %arg2: memref<2x8x128xf32, #tpu.memory_space<vmem>>, %arg3: memref<2x8x128xf32, #tpu.memory_space<vmem>>, %arg4: memref<1x8x128xf32, #tpu.memory_space<vmem>>) attributes {dimension_semantics = [#tpu.dimension_semantics<parallel>], iteration_bounds = array<i64: 2>, scalar_prefetch = 0 : i64, scratch_operands = 0 : i64, tpu.core_type = #tpu.core_type<tc>, window_params = [{transform_indices = @transform_0, window_bounds = array<i64: 4>}, {transform_indices = @transform_1, window_bounds = array<i64: 2, 8, 128>}, {transform_indices = @transform_2, window_bounds = array<i64: 2, 8, 128>}, {transform_indices = @transform_3, window_bounds = array<i64: 1, 8, 128>}]} {
    %c2_i32 = arith.constant 2 : i32
    %0 = arith.muli %arg0, %c2_i32 : i32
    %cst = arith.constant 0.000000e+00 : f32
    %1 = vector.broadcast %cst : f32 to vector<8x128xf32>
    %c0_i32 = arith.constant 0 : i32
    %2 = arith.index_cast %c0_i32 : i32 to index
    %c0 = arith.constant 0 : index
    %c0_0 = arith.constant 0 : index
    %3 = vector.load %arg2[%2, %c0, %c0_0] : memref<2x8x128xf32, #tpu.memory_space<vmem>>, vector<1x8x128xf32>
    %4 = vector.shape_cast %3 : vector<1x8x128xf32> to vector<8x128xf32>
    %5 = arith.index_cast %c0_i32 : i32 to index
    %c0_1 = arith.constant 0 : index
    %c0_2 = arith.constant 0 : index
    %6 = vector.load %arg3[%5, %c0_1, %c0_2] : memref<2x8x128xf32, #tpu.memory_space<vmem>>, vector<1x8x128xf32>
    %7 = vector.shape_cast %6 : vector<1x8x128xf32> to vector<8x128xf32>
    %8 = math.log %4 : vector<8x128xf32>
    %cst_3 = arith.constant -1.000000e+02 : f32
    %9 = vector.broadcast %cst_3 : f32 to vector<8x128xf32>
    %10 = arith.maximumf %8, %9 : vector<8x128xf32>
    %cst_4 = arith.constant 1.000000e+00 : f32
    %11 = vector.broadcast %cst_4 : f32 to vector<8x128xf32>
    %12 = arith.subf %11, %4 : vector<8x128xf32>
    %13 = math.log %12 : vector<8x128xf32>
    %cst_5 = arith.constant -1.000000e+02 : f32
    %14 = vector.broadcast %cst_5 : f32 to vector<8x128xf32>
    %15 = arith.maximumf %13, %14 : vector<8x128xf32>
    %16 = arith.subf %10, %15 : vector<8x128xf32>
    %17 = arith.mulf %7, %16 : vector<8x128xf32>
    %18 = arith.addf %15, %17 : vector<8x128xf32>
    %19 = arith.addi %0, %c0_i32 : i32
    %20 = arith.index_cast %19 : i32 to index
    %21 = memref.load %arg1[%20] : memref<4xf32, #tpu.memory_space<smem>>
    %22 = vector.broadcast %21 : f32 to vector<8x128xf32>
    %23 = arith.mulf %22, %18 : vector<8x128xf32>
    %24 = arith.addf %1, %23 : vector<8x128xf32>
    %c1_i32 = arith.constant 1 : i32
    %25 = arith.index_cast %c1_i32 : i32 to index
    %c0_6 = arith.constant 0 : index
    %c0_7 = arith.constant 0 : index
    %26 = vector.load %arg2[%25, %c0_6, %c0_7] : memref<2x8x128xf32, #tpu.memory_space<vmem>>, vector<1x8x128xf32>
    %27 = vector.shape_cast %26 : vector<1x8x128xf32> to vector<8x128xf32>
    %28 = arith.index_cast %c1_i32 : i32 to index
    %c0_8 = arith.constant 0 : index
    %c0_9 = arith.constant 0 : index
    %29 = vector.load %arg3[%28, %c0_8, %c0_9] : memref<2x8x128xf32, #tpu.memory_space<vmem>>, vector<1x8x128xf32>
    %30 = vector.shape_cast %29 : vector<1x8x128xf32> to vector<8x128xf32>
    %31 = math.log %27 : vector<8x128xf32>
    %cst_10 = arith.constant -1.000000e+02 : f32
    %32 = vector.broadcast %cst_10 : f32 to vector<8x128xf32>
    %33 = arith.maximumf %31, %32 : vector<8x128xf32>
    %cst_11 = arith.constant 1.000000e+00 : f32
    %34 = vector.broadcast %cst_11 : f32 to vector<8x128xf32>
    %35 = arith.subf %34, %27 : vector<8x128xf32>
    %36 = math.log %35 : vector<8x128xf32>
    %cst_12 = arith.constant -1.000000e+02 : f32
    %37 = vector.broadcast %cst_12 : f32 to vector<8x128xf32>
    %38 = arith.maximumf %36, %37 : vector<8x128xf32>
    %39 = arith.subf %33, %38 : vector<8x128xf32>
    %40 = arith.mulf %30, %39 : vector<8x128xf32>
    %41 = arith.addf %38, %40 : vector<8x128xf32>
    %42 = arith.addi %0, %c1_i32 : i32
    %43 = arith.index_cast %42 : i32 to index
    %44 = memref.load %arg1[%43] : memref<4xf32, #tpu.memory_space<smem>>
    %45 = vector.broadcast %44 : f32 to vector<8x128xf32>
    %46 = arith.mulf %45, %41 : vector<8x128xf32>
    %47 = arith.addf %24, %46 : vector<8x128xf32>
    %c2_i32_13 = arith.constant 2 : i32
    %48 = vector.shape_cast %47 : vector<8x128xf32> to vector<1x8x128xf32>
    %c0_14 = arith.constant 0 : index
    %c0_15 = arith.constant 0 : index
    %c0_16 = arith.constant 0 : index
    %49 = vector.load %arg4[%c0_14, %c0_15, %c0_16] : memref<1x8x128xf32, #tpu.memory_space<vmem>>, vector<1x8x128xf32>
    tpu.vector_store %arg4[%c0_14, %c0_15, %c0_16], %48 {strides = array<i32>} : memref<1x8x128xf32, #tpu.memory_space<vmem>>, vector<1x8x128xf32>,
    return
  }
  func.func @transform_0(%arg0: i32) -> i32 {
    %c0_i32 = arith.constant 0 : i32
    %c0_i32_0 = arith.constant 0 : i32
    return %c0_i32 : i32
  }
  func.func @transform_1(%arg0: i32) -> (i32, i32, i32) {
    %c0_i32 = arith.constant 0 : i32
    %c0_i32_0 = arith.constant 0 : i32
    %c0_i32_1 = arith.constant 0 : i32
    return %arg0, %c0_i32, %c0_i32_0 : i32, i32, i32
  }
  func.func @transform_2(%arg0: i32) -> (i32, i32, i32) {
    %c0_i32 = arith.constant 0 : i32
    %c0_i32_0 = arith.constant 0 : i32
    %c0_i32_1 = arith.constant 0 : i32
    return %arg0, %c0_i32, %c0_i32_0 : i32, i32, i32
  }
  func.func @transform_3(%arg0: i32) -> (i32, i32, i32) {
    %c0_i32 = arith.constant 0 : i32
    %c0_i32_0 = arith.constant 0 : i32
    %c0_i32_1 = arith.constant 0 : i32
    return %arg0, %c0_i32, %c0_i32_0 : i32, i32, i32
  }
}

</mosaic_0001>

<bundles_post_ra>
// kernel: multiscaled_bce_loss.1
= control target key start
LH: loop header
LB: loop body
LE: loop exit
PB: predicated region body
PF: predicated region fallthrough
CT: control target
= control target key end

     0   :  { %8 = vsyncpa [#allocation3], 0  ;;  %s413_s12 = smov 0   ;;  %s442_s0 = inlined_call_operand.vmem [shape: f32[4], index: 0, kind: input, shape index: {}]   ;;  %s443_s1 = inlined_call_operand.vmem [shape: f32[4,8,128], index: 1, kind: input, shape index: {}]   ;;  %s444_s2 = inlined_call_operand.vmem [shape: f32[4,8,128], index: 2, kind: input, shape index: {}]   ;;  %s445_s3 = inlined_call_operand.vmem [shape: f32[2,8,128], index: 3, kind: output, shape index: {}]  }
   0x1 LB: > { %s419_s13 = sadd.s32 4294967295, %s390_s12   ;;  %p323_p0 = scmp.ge.s32.totalorder %s390_s12, 1  ;;  %s390_s12 = sphi %s413_s12, %s14_s12  }
   0x2   : > { %p118_p1 = scmp.lt.s32.totalorder %s390_s12, 3  ;;  %s130_s16 = sshll.u32 %s442_s0, 4  ;;  %s131_s16 = int_to_ptr.vmem [resolvable:$true] %s130_s16 }
   0x3   : > { %p346_p3 = scmp.eq.s32.totalorder %s419_s13, 0  ;;  %s392_s17 = smov [#allocation2]  }
   0x4   : > { %p119_p2 = pnand %p323_p0, %p118_p1 }
   0x6   : > { %p342_p4 = pneg %p119_p2  ;;  %161 = sbr.rel (%p119_p2) target bundleno = 47 (0x2f), region = 32 }
   0x8   : > { %p343_p5 = pnand %p346_p3, %p342_p4 }
   0xa   : > { %345 = dma.vmem_to_smem (!%p343_p5), %s131_s16, 16, %s392_s17, [#allocation3]  }
   0xb   : > { %385 = dma.done.wait (%p346_p3), [#allocation3], 16  }
   0xc   : > { %387 = vsyncadd (%p346_p3), [#allocation3], 4294967280 }
   0xd   : > { %168 = sfence }
   0xe   : > { %s328_s18 = sshll.u32 %s419_s13, 1  ;;  %p203_p7 = scmp.lt.s32.totalorder %s419_s13, 1 }
   0xf   : > { %p192_p6 = scmp.lt.s32.totalorder %s328_s18, 3  ;;  %s238_s24 = sadd.s32 1, %s328_s18 }
  0x10   : > { %s220_s25 = sld [smem:[#allocation2 + %s328_s18]]  ;;  %s447_s13 = smov (!%p203_p7, %s419_s13), 1 }
  0x11   : > { %s193_s19 = scalar_select %p192_p6, %s328_s18, 3 }
  0x12   : > { %s239_s29 = sld [smem:[#allocation2 + %s238_s24]]  ;;  %s332_s30 = sshll.u32 %s447_s13, 3 }
  0x13   : > { %s329_s20 = sshll.u32 %s193_s19, 3  ;;  %s206_s6 = scalar_lea.vmem %s445_s3, %s332_s30 }
  0x14   : > { %s195_s23 = scalar_lea.vmem %s443_s1, %s329_s20  ;;  %s201_s28 = scalar_lea.vmem %s444_s2, %s329_s20 }
  0x15   : > { %v208_v0 = vld [vmem:[%s195_s23] sm:$0xff]  ;;  %v334_v1 = vld [vmem:[%s195_s23 + $0x8] sm:$0xff] }
  0x16   : > { %357 = vlog2.f32 %v208_v0  ;;  %v213_v2 = vsub.f32 1.0, %v208_v0  ;;  %v231_v3 = vsub.f32 1.0, %v334_v1  ;;  %v209_v15 = vld [vmem:[%s201_s28] sm:$0xff]  ;;  %v335_v18 = vld [vmem:[%s201_s28 + $0x8] sm:$0xff]  ;;  %v221_v21 = vstv %s220_s25 }
  0x17   : > { %359 = vlog2.f32 %v334_v1 }
  0x18   : > { %361 = vlog2.f32 %v213_v2  ;;  %v240_v24 = vstv %s239_s29 }
  0x19   : > { %363 = vlog2.f32 %v231_v3 }
  0x1c   : > { %v358_v4 = vpop.eup %357 }
  0x1d   : > { %v360_v5 = vpop.eup %359  ;;  %v211_v6 = vmul.f32 0.6931472, %v358_v4 }
  0x1e   : > { %v362_v7 = vpop.eup %361  ;;  %v229_v8 = vmul.f32 0.6931472, %v360_v5 }
  0x1f   : > { %v364_v9 = vpop.eup %363  ;;  %v212_v10 = vmax.f32 %v211_v6, -100.0  ;;  %v215_v11 = vmul.f32 0.6931472, %v362_v7 }
  0x20   : > { %v230_v12 = vmax.f32 %v229_v8, -100.0  ;;  %v233_v13 = vmul.f32 0.6931472, %v364_v9 }
  0x21   : > { %v216_v14 = vmax.f32 %v215_v11, -100.0 }
  0x22   : > { %v234_v16 = vmax.f32 %v233_v13, -100.0 }
  0x23   : > { %v217_v17 = vsub.f32 %v212_v10, %v216_v14 }
  0x24   : > { %v235_v19 = vsub.f32 %v230_v12, %v234_v16 }
  0x25   : > { %v218_v20 = vmul.f32 %v217_v17, %v209_v15 }
  0x26   : > { %v236_v22 = vmul.f32 %v335_v18, %v235_v19 }
  0x27   : > { %v219_v23 = vadd.f32 %v218_v20, %v216_v14 }
  0x28   : > { %v237_v25 = vadd.f32 %v236_v22, %v234_v16 }
  0x29   : > { %v222_v26 = vmul.f32 %v221_v21, %v219_v23 }
  0x2a   : > { %v241_v27 = vmul.f32 %v240_v24, %v237_v25 }
  0x2c   : > { %v242_v28 = vadd.f32 %v241_v27, %v222_v26 }
  0x2e   : > { %243 = vst [vmem:[%s206_s6] sm:$0xff] %v242_v28 }
  0x2f PF: > { %s14_s12 = sadd.s32 1, %s390_s12  }
  0x30   : > { %p11_p8 = scmp.ge.s32.totalorder %s14_s12, 4  }
  0x32   :  { %13 = sbr.rel (!%p11_p8) target bundleno = 1 (0x1), region = 72 }
  0x37   :  { %263 = vsyncpa [#allocation3], 1 }
  0x38   :  { %265 = vsyncpa [#allocation3 + $0x1], 1 }

</bundles_post_ra>
